<compile_context>
chip_gen: v6e
topology: v6e:2x2x1
jax: 0.10.0
libtpu: 0.0.40
codegen_flags: <defaults>
</compile_context>

<pallas_src>
import functools

import jax
import jax.numpy as jnp
from jax.experimental import pallas as pl
from jax.experimental.pallas import tpu as pltpu


def _decoder_kernel(z_ref,
                    w_cat_ref, b_cat_ref,
                    w_l2_ref, b_l2_ref,
                    w_l3_ref, b_l3_ref,
                    a_hat_ref, a_raw_ref, attr_stats_ref,
                    *pack_scratch,
                    node_num, hidden_shape, batch_per_step, lane_pack):
    """One grid step handles `batch_per_step` batches (M = Bp*N rows).

    z_ref          : (M, L)
    a_hat_ref      : (R, 128) packed, or (M, N) fallback
    a_raw_ref      : (R, 128) packed, or (M, N) fallback
    attr_stats_ref : (M, A+2)  [..., :A]=attr, [..., A]=row max, [..., A+1]=row min
    pack_scratch   : two (M, N) VMEM scratches (only when lane_pack > 0)
    """
    N = node_num
    H = hidden_shape
    Bp = batch_per_step
    M = Bp * N

    z = z_ref[...]                                                     # (M, L)

    # Fused dense1 + linear1: one MXU pass over the shared LHS z. Both slices
    # of the 96-lane result sit inside one 128-lane tile -> no VMEM copies.
    zc = jnp.dot(z, w_cat_ref[...],
                 preferred_element_type=jnp.float32) + b_cat_ref[0]    # (M, H+32)
    x = jnp.maximum(zc[:, :H], 0.0)       # dense1 -> relu   (M, 64)
    y = jnp.maximum(zc[:, H:], 0.0)       # linear1 -> relu  (M, 32)

    # Attribute branch.
    y = jnp.dot(y, w_l2_ref[...], preferred_element_type=jnp.float32) + b_l2_ref[0]
    y = jnp.maximum(y, 0.0)                                            # (M, 64)
    y = jnp.dot(y, w_l3_ref[...], preferred_element_type=jnp.float32) + b_l3_ref[0]
    attr = jax.nn.sigmoid(y)                                           # (M, A)

    # Adjacency branch: one batched contraction over the whole block.
    x3 = x.reshape(Bp, N, H)                       # leading split -> free reshape
    a3 = jnp.einsum("bnh,bmh->bnm", x3, x3,
                    preferred_element_type=jnp.float32)                # (Bp, N, N)
    mx = jnp.max(a3, axis=-1, keepdims=True)                           # (Bp, N, 1)
    mn = jnp.min(a3, axis=-1, keepdims=True)
    # Exact division (matches the PyTorch reference); approx reciprocal would
    # be the free EUP path but breaks the 1e-5 tolerance.
    a_hat3 = jnp.clip((a3 - mn) / (mx + 1e-13), 0.01, 0.99)            # (Bp, N, N)

    # attr + per-node stats share one output stream.
    attr_stats_ref[...] = jnp.concatenate(
        [attr, mx.reshape(M, 1), mn.reshape(M, 1)], axis=-1)           # (M, A+2)

    if lane_pack:
        # Lane-dense packing: each 128-lane output row holds `lane_pack`
        # batches' flattened (N, N) Gram tiles in flat row-major order, so the
        # writeback DMA rows are full, unmasked 512-B stores and the wrapper
        # reshape to (B, N, N) is a pure metadata reshape.
        P = lane_pack
        R = (Bp * N * N) // 128
        raw_s, hat_s = pack_scratch

        def pack(v3, s_ref, o_ref):
            s_ref[...] = v3.reshape(M, N)          # leading merge -> free reshape
            # Gather row (b*N + i) for batches b = k*P + p via sublane-strided
            # loads, then lane-concatenate into (R, 128).
            pieces = [s_ref[pl.ds(p * N + i, R, stride=P * N), :]
                      for p in range(P) for i in range(N)]
            o_ref[...] = jnp.concatenate(pieces, axis=-1)              # (R, 128)

        pack(a3, raw_s, a_raw_ref)
        pack(a_hat3, hat_s, a_hat_ref)
    else:
        # Fallback layout when N*N does not tile 128 lanes.
        a_raw_ref[...] = a3.reshape(M, N)
        a_hat_ref[...] = a_hat3.reshape(M, N)


def decoder_v2_forward(z, params, *, max_rows_per_step=1024):
    """z: (B, N, L) float32. params: weights (in,out) and biases (1,out)."""
    B, N, L = z.shape
    H = params["w_d1"].shape[1]          # 64
    A = params["w_l3"].shape[1]          # attr_dim

    # Fuse the two z-consuming linears once, outside the kernel.
    w_cat = jnp.concatenate([params["w_d1"], params["w_l1"]], axis=1)  # (L, H+32)
    b_cat = jnp.concatenate([params["b_d1"], params["b_l1"]], axis=1)  # (1, H+32)

    # Lane-dense adjacency packing only when N*N tiles 128 lanes (N=8 here).
    pack_adj = (N * N <= 128) and (128 % (N * N) == 0)
    P = (128 // (N * N)) if pack_adj else 1

    # Row-tiled grid: at most ~max_rows_per_step rows per step, batch count per
    # step a multiple of the lane-pack factor; small/odd batches are padded.
    max_bp = max(P, ((max_rows_per_step // N) // P) * P)
    G = max(1, pl.cdiv(B, max_bp))
    Bp = pl.cdiv(B, G)
    Bp = pl.cdiv(Bp, P) * P
    B_pad = G * Bp
    M = Bp * N
    R = (Bp * N * N) // 128 if pack_adj else None

    z = z.astype(jnp.float32)
    if B_pad != B:
        z = jnp.concatenate([z, jnp.zeros((B_pad - B, N, L), jnp.float32)], axis=0)
    z_r = z.reshape(G, M, L)

    def const_spec(arr):
        # Whole weight every step; constant block index -> stays VMEM-resident.
        return pl.BlockSpec(arr.shape, lambda *_: (0,) * arr.ndim)

    weights = [w_cat, b_cat, params["w_l2"], params["b_l2"],
               params["w_l3"], params["b_l3"]]

    in_specs = [pl.BlockSpec((None, M, L), lambda g: (g, 0, 0))]
    in_specs += [const_spec(w) for w in weights]

    if pack_adj:
        adj_shape = jax.ShapeDtypeStruct((G, R, 128), jnp.float32)
        adj_spec = pl.BlockSpec((None, R, 128), lambda g: (g, 0, 0))
        scratch_shapes = [pltpu.VMEM((M, N), jnp.float32),
                          pltpu.VMEM((M, N), jnp.float32)]
    else:
        adj_shape = jax.ShapeDtypeStruct((G, M, N), jnp.float32)
        adj_spec = pl.BlockSpec((None, M, N), lambda g: (g, 0, 0))
        scratch_shapes = []

    out_shapes = (adj_shape,                                           # A_hat (packed)
                  adj_shape,                                           # A_hat_raw (packed)
                  jax.ShapeDtypeStruct((G, M, A + 2), jnp.float32))    # attr | max | min
    out_specs = (adj_spec, adj_spec,
                 pl.BlockSpec((None, M, A + 2), lambda g: (g, 0, 0)))

    Mtot = B_pad * N
    flops = 2 * Mtot * (L * (H + 32) + N * H + 32 * 64 + 64 * A)
    bytes_accessed = 4 * (B_pad * N * L
                          + sum(int(w.size) for w in weights)
                          + Mtot * (2 * N + A + 2))
    cost = pl.CostEstimate(flops=flops,
                           transcendentals=Mtot * A,
                           bytes_accessed=bytes_accessed)

    kernel = functools.partial(_decoder_kernel, node_num=N, hidden_shape=H,
                               batch_per_step=Bp,
                               lane_pack=(P if pack_adj else 0))

    fn = pl.pallas_call(
        kernel,
        out_shape=out_shapes,
        grid_spec=pltpu.PrefetchScalarGridSpec(
            num_scalar_prefetch=0,
            grid=(G,),
            in_specs=in_specs,
            out_specs=out_specs,
            scratch_shapes=scratch_shapes,
        ),
        compiler_params=pltpu.CompilerParams(
            dimension_semantics=("parallel",),
            vmem_limit_bytes=32 * 1024 * 1024),
        cost_estimate=cost,
    )
    a_hat_p, a_raw_p, attr_stats = fn(z_r, *weights)

    # Lane-dense kernel outputs; everything below is contiguous metadata
    # reshape / small slices done once in the wrapper.
    A_hat_raw = a_raw_p.reshape(B_pad, N, N)[:B]
    A_hat = a_hat_p.reshape(B_pad, N, N)[:B][..., None]
    attr_stats = attr_stats.reshape(B_pad, N, A + 2)[:B]
    attr_hat = attr_stats[..., :A]
    max_score = attr_stats[..., A:A + 1]
    min_score = attr_stats[..., A + 1:A + 2]
    return A_hat, attr_hat, A_hat_raw, max_score, min_score


def make_params(key, latent_dim, attr_dim, hidden_shape=64):
    """Deterministic synthetic parameters (PyTorch-style fan-in init, (in,out))."""
    ks = jax.random.split(key, 8)

    def lin(kw, kb, fan_in, fan_out):
        bound = 1.0 / jnp.sqrt(fan_in)
        w = jax.random.uniform(kw, (fan_in, fan_out), jnp.float32, -bound, bound)
        b = jax.random.uniform(kb, (1, fan_out), jnp.float32, -bound, bound)
        return w, b

    w_d1, b_d1 = lin(ks[0], ks[1], latent_dim, hidden_shape)   # dense1
    w_l1, b_l1 = lin(ks[2], ks[3], latent_dim, 32)             # linear1
    w_l2, b_l2 = lin(ks[4], ks[5], 32, 64)                     # linear2
    w_l3, b_l3 = lin(ks[6], ks[7], 64, attr_dim)               # linear3
    return dict(w_d1=w_d1, b_d1=b_d1, w_l1=w_l1, b_l1=b_l1,
                w_l2=w_l2, b_l2=b_l2, w_l3=w_l3, b_l3=b_l3)


def _reference(z, p):
    """Pure-JAX reference mirroring the PyTorch forward."""
    x = jax.nn.relu(z @ p["w_d1"] + p["b_d1"])
    a_raw = jnp.einsum("bnh,bmh->bnm", x, x)
    mx = a_raw.max(axis=-1, keepdims=True)
    mn = a_raw.min(axis=-1, keepdims=True)
    a_hat = jnp.clip((a_raw - mn) / (mx + 1e-13), 0.01, 0.99)[..., None]
    y = jax.nn.relu(z @ p["w_l1"] + p["b_l1"])
    y = jax.nn.relu(y @ p["w_l2"] + p["b_l2"])
    attr = jax.nn.sigmoid(y @ p["w_l3"] + p["b_l3"])
    return a_hat, attr, a_raw, mx, mn


if __name__ == "__main__":
    # Small shapes implied by the module: node_num=8, latent_dim=16, attr_dim=4.
    B, N, L, A = 2, 8, 16, 4
    key = jax.random.PRNGKey(0)
    k_z, k_p = jax.random.split(key)
    z = jax.random.normal(k_z, (B, N, L), jnp.float32)
    params = make_params(k_p, latent_dim=L, attr_dim=A)

    outs = jax.block_until_ready(decoder_v2_forward(z, params))
    refs = _reference(z, params)
    for o, r in zip(outs, refs):
        assert o.shape == r.shape and o.dtype == r.dtype
        assert jnp.allclose(o, r, atol=1e-5, rtol=1e-5)

    # Also exercise the multi-step "parallel" grid + batch-padding path.
    z2 = jax.random.normal(jax.random.PRNGKey(1), (5, N, L), jnp.float32)
    outs2 = jax.block_until_ready(
        decoder_v2_forward(z2, params, max_rows_per_step=16))
    refs2 = _reference(z2, params)
    for o, r in zip(outs2, refs2):
        assert o.shape == r.shape and o.dtype == r.dtype
        assert jnp.allclose(o, r, atol=1e-5, rtol=1e-5)

    print("KERNEL_OK")
</pallas_src>

<mosaic_0001>
module attributes {stable_mosaic.version = 11 : i64} {
  func.func @_decoder_kernel(%arg0: i32, %arg1: memref<1x16x16xf32, #tpu.memory_space<vmem>>, %arg2: memref<16x96xf32, #tpu.memory_space<vmem>>, %arg3: memref<1x96xf32, #tpu.memory_space<vmem>>, %arg4: memref<32x64xf32, #tpu.memory_space<vmem>>, %arg5: memref<1x64xf32, #tpu.memory_space<vmem>>, %arg6: memref<64x4xf32, #tpu.memory_space<vmem>>, %arg7: memref<1x4xf32, #tpu.memory_space<vmem>>, %arg8: memref<1x1x128xf32, #tpu.memory_space<vmem>>, %arg9: memref<1x1x128xf32, #tpu.memory_space<vmem>>, %arg10: memref<1x16x6xf32, #tpu.memory_space<vmem>>, %arg11: memref<16x8xf32, #tpu.memory_space<vmem>>, %arg12: memref<16x8xf32, #tpu.memory_space<vmem>>) attributes {dimension_semantics = [#tpu.dimension_semantics<parallel>], iteration_bounds = array<i64: 1>, scalar_prefetch = 0 : i64, scratch_operands = 2 : i64, tpu.core_type = #tpu.core_type<tc>, window_params = [{transform_indices = @transform_0, window_bounds = array<i64: 1, 16, 16>}, {pipeline_mode = #tpu.pipeline_mode<synchronous>, transform_indices = @transform_1, window_bounds = array<i64: 16, 96>}, {pipeline_mode = #tpu.pipeline_mode<synchronous>, transform_indices = @transform_2, window_bounds = array<i64: 1, 96>}, {pipeline_mode = #tpu.pipeline_mode<synchronous>, transform_indices = @transform_3, window_bounds = array<i64: 32, 64>}, {pipeline_mode = #tpu.pipeline_mode<synchronous>, transform_indices = @transform_4, window_bounds = array<i64: 1, 64>}, {pipeline_mode = #tpu.pipeline_mode<synchronous>, transform_indices = @transform_5, window_bounds = array<i64: 64, 4>}, {pipeline_mode = #tpu.pipeline_mode<synchronous>, transform_indices = @transform_6, window_bounds = array<i64: 1, 4>}, {transform_indices = @transform_7, window_bounds = array<i64: 1, 1, 128>}, {transform_indices = @transform_8, window_bounds = array<i64: 1, 1, 128>}, {transform_indices = @transform_9, window_bounds = array<i64: 1, 16, 6>}]} {
    %c0 = arith.constant 0 : index
    %c0_0 = arith.constant 0 : index
    %c0_1 = arith.constant 0 : index
    %0 = vector.load %arg1[%c0, %c0_0, %c0_1] : memref<1x16x16xf32, #tpu.memory_space<vmem>>, vector<1x16x16xf32>
    %1 = vector.shape_cast %0 : vector<1x16x16xf32> to vector<16x16xf32>
    %c0_2 = arith.constant 0 : index
    %c0_3 = arith.constant 0 : index
    %2 = vector.load %arg2[%c0_2, %c0_3] : memref<16x96xf32, #tpu.memory_space<vmem>>, vector<16x96xf32>
    %cst = arith.constant dense<0.000000e+00> : vector<16x96xf32>
    %3 = tpu.matmul %1, %2, %cst {dimension_numbers = #tpu.dot_dimension_numbers<[1], [0], [0], [1], [0, 0, 1, 1], [], []>} : vector<16x16xf32>, vector<16x96xf32>, vector<16x96xf32> -> vector<16x96xf32>
    %c0_4 = arith.constant 0 : index
    %c0_5 = arith.constant 0 : index
    %4 = vector.load %arg3[%c0_4, %c0_5] : memref<1x96xf32, #tpu.memory_space<vmem>>, vector<1x96xf32>
    %5 = vector.shape_cast %4 : vector<1x96xf32> to vector<96xf32>
    %6 = vector.shape_cast %5 : vector<96xf32> to vector<1x96xf32>
    %7 = vector.broadcast %6 : vector<1x96xf32> to vector<16x96xf32>
    %8 = arith.addf %3, %7 : vector<16x96xf32>
    %9 = vector.extract_strided_slice %8 {offsets = [0, 0], sizes = [16, 64], strides = [1, 1]} : vector<16x96xf32> to vector<16x64xf32>
    %cst_6 = arith.constant 0.000000e+00 : f32
    %10 = vector.broadcast %cst_6 : f32 to vector<16x64xf32>
    %11 = arith.maximumf %9, %10 : vector<16x64xf32>
    %12 = vector.extract_strided_slice %8 {offsets = [0, 64], sizes = [16, 32], strides = [1, 1]} : vector<16x96xf32> to vector<16x32xf32>
    %cst_7 = arith.constant 0.000000e+00 : f32
    %13 = vector.broadcast %cst_7 : f32 to vector<16x32xf32>
    %14 = arith.maximumf %12, %13 : vector<16x32xf32>
    %c0_8 = arith.constant 0 : index
    %c0_9 = arith.constant 0 : index
    %15 = vector.load %arg4[%c0_8, %c0_9] : memref<32x64xf32, #tpu.memory_space<vmem>>, vector<32x64xf32>
    %cst_10 = arith.constant dense<0.000000e+00> : vector<16x64xf32>
    %16 = tpu.matmul %14, %15, %cst_10 {dimension_numbers = #tpu.dot_dimension_numbers<[1], [0], [0], [1], [0, 0, 1, 1], [], []>} : vector<16x32xf32>, vector<32x64xf32>, vector<16x64xf32> -> vector<16x64xf32>
    %c0_11 = arith.constant 0 : index
    %c0_12 = arith.constant 0 : index
    %17 = vector.load %arg5[%c0_11, %c0_12] : memref<1x64xf32, #tpu.memory_space<vmem>>, vector<1x64xf32>
    %18 = vector.shape_cast %17 : vector<1x64xf32> to vector<64xf32>
    %19 = vector.shape_cast %18 : vector<64xf32> to vector<1x64xf32>
    %20 = vector.broadcast %19 : vector<1x64xf32> to vector<16x64xf32>
    %21 = arith.addf %16, %20 : vector<16x64xf32>
    %cst_13 = arith.constant 0.000000e+00 : f32
    %22 = vector.broadcast %cst_13 : f32 to vector<16x64xf32>
    %23 = arith.maximumf %21, %22 : vector<16x64xf32>
    %c0_14 = arith.constant 0 : index
    %c0_15 = arith.constant 0 : index
    %24 = vector.load %arg6[%c0_14, %c0_15] : memref<64x4xf32, #tpu.memory_space<vmem>>, vector<64x4xf32>
    %cst_16 = arith.constant dense<0.000000e+00> : vector<16x4xf32>
    %25 = tpu.matmul %23, %24, %cst_16 {dimension_numbers = #tpu.dot_dimension_numbers<[1], [0], [0], [1], [0, 0, 1, 1], [], []>} : vector<16x64xf32>, vector<64x4xf32>, vector<16x4xf32> -> vector<16x4xf32>
    %c0_17 = arith.constant 0 : index
    %c0_18 = arith.constant 0 : index
    %26 = vector.load %arg7[%c0_17, %c0_18] : memref<1x4xf32, #tpu.memory_space<vmem>>, vector<1x4xf32>
    %27 = vector.shape_cast %26 : vector<1x4xf32> to vector<4xf32>
    %28 = vector.shape_cast %27 : vector<4xf32> to vector<1x4xf32>
    %29 = vector.broadcast %28 : vector<1x4xf32> to vector<16x4xf32>
    %30 = arith.addf %25, %29 : vector<16x4xf32>
    %31 = arith.negf %30 : vector<16x4xf32>
    %32 = math.exp %31 : vector<16x4xf32>
    %cst_19 = arith.constant 1.000000e+00 : f32
    %33 = vector.broadcast %cst_19 : f32 to vector<16x4xf32>
    %34 = arith.addf %33, %32 : vector<16x4xf32>
    %35 = arith.divf %33, %34 : vector<16x4xf32>
    %36 = vector.shape_cast %11 : vector<16x64xf32> to vector<2x8x64xf32>
    "tpu.trace_start"() <{level = 10 : i32, message = "bnh,bmh->bnm"}> : () -> ()
    %cst_20 = arith.constant dense<0.000000e+00> : vector<2x8x8xf32>
    %37 = tpu.matmul %36, %36, %cst_20 {dimension_numbers = #tpu.dot_dimension_numbers<[2], [2], [1], [1], [0, 0, 0, 1, 1, 1], [0], [0]>} : vector<2x8x64xf32>, vector<2x8x64xf32>, vector<2x8x8xf32> -> vector<2x8x8xf32>
    "tpu.trace_stop"() : () -> ()
    %cst_21 = arith.constant dense<0xFF800000> : vector<2x8xf32>
    %38 = vector.multi_reduction <maximumf>, %37, %cst_21 [2] : vector<2x8x8xf32> to vector<2x8xf32>
    %39 = vector.shape_cast %38 : vector<2x8xf32> to vector<2x8x1xf32>
    %cst_22 = arith.constant dense<0x7F800000> : vector<2x8xf32>
    %40 = vector.multi_reduction <minimumf>, %37, %cst_22 [2] : vector<2x8x8xf32> to vector<2x8xf32>
    %41 = vector.shape_cast %40 : vector<2x8xf32> to vector<2x8x1xf32>
    %42 = vector.broadcast %41 : vector<2x8x1xf32> to vector<2x8x8xf32>
    %43 = arith.subf %37, %42 : vector<2x8x8xf32>
    %cst_23 = arith.constant 9.99999982E-14 : f32
    %44 = vector.broadcast %cst_23 : f32 to vector<2x8x1xf32>
    %45 = arith.addf %39, %44 : vector<2x8x1xf32>
    %46 = vector.broadcast %45 : vector<2x8x1xf32> to vector<2x8x8xf32>
    %47 = arith.divf %43, %46 : vector<2x8x8xf32>
    %cst_24 = arith.constant 0.00999999977 : f32
    %cst_25 = arith.constant 9.900000e-01 : f32
    %48 = vector.broadcast %cst_24 : f32 to vector<2x8x8xf32>
    %49 = arith.maximumf %48, %47 : vector<2x8x8xf32>
    %50 = vector.broadcast %cst_25 : f32 to vector<2x8x8xf32>
    %51 = arith.minimumf %50, %49 : vector<2x8x8xf32>
    %52 = vector.shape_cast %39 : vector<2x8x1xf32> to vector<16x1xf32>
    %53 = vector.shape_cast %41 : vector<2x8x1xf32> to vector<16x1xf32>
    %54 = tpu.concatenate %35, %52, %53 in 1 : vector<16x4xf32>, vector<16x1xf32>, vector<16x1xf32> -> vector<16x6xf32>
    %c0_26 = arith.constant 0 : index
    %c0_27 = arith.constant 0 : index
    %c0_28 = arith.constant 0 : index
    %55 = vector.load %arg10[%c0_26, %c0_27, %c0_28] : memref<1x16x6xf32, #tpu.memory_space<vmem>>, vector<1x16x6xf32>
    %56 = vector.shape_cast %55 : vector<1x16x6xf32> to vector<16x6xf32>
    %57 = vector.shape_cast %54 : vector<16x6xf32> to vector<1x16x6xf32>
    tpu.vector_store %arg10[%c0_26, %c0_27, %c0_28], %57 {strides = array<i32>} : memref<1x16x6xf32, #tpu.memory_space<vmem>>, vector<1x16x6xf32>,
    %58 = vector.shape_cast %37 : vector<2x8x8xf32> to vector<16x8xf32>
    %c0_29 = arith.constant 0 : index
    %c0_30 = arith.constant 0 : index
    %59 = vector.load %arg11[%c0_29, %c0_30] : memref<16x8xf32, #tpu.memory_space<vmem>>, vector<16x8xf32>
    tpu.vector_store %arg11[%c0_29, %c0_30], %58 {strides = array<i32>} : memref<16x8xf32, #tpu.memory_space<vmem>>, vector<16x8xf32>,
    %c0_31 = arith.constant 0 : index
    %c0_32 = arith.constant 0 : index
    %60 = tpu.strided_load %arg11[%c0_31, %c0_32] {strides = array<i32: 16, 1>} : memref<16x8xf32, #tpu.memory_space<vmem>>, vector<1x8xf32>
    %c1 = arith.constant 1 : index
    %c0_33 = arith.constant 0 : index
    %61 = tpu.strided_load %arg11[%c1, %c0_33] {strides = array<i32: 16, 1>} : memref<16x8xf32, #tpu.memory_space<vmem>>, vector<1x8xf32>
    %c2 = arith.constant 2 : index
    %c0_34 = arith.constant 0 : index
    %62 = tpu.strided_load %arg11[%c2, %c0_34] {strides = array<i32: 16, 1>} : memref<16x8xf32, #tpu.memory_space<vmem>>, vector<1x8xf32>
    %c3 = arith.constant 3 : index
    %c0_35 = arith.constant 0 : index
    %63 = tpu.strided_load %arg11[%c3, %c0_35] {strides = array<i32: 16, 1>} : memref<16x8xf32, #tpu.memory_space<vmem>>, vector<1x8xf32>
    %c4 = arith.constant 4 : index
    %c0_36 = arith.constant 0 : index
    %64 = tpu.strided_load %arg11[%c4, %c0_36] {strides = array<i32: 16, 1>} : memref<16x8xf32, #tpu.memory_space<vmem>>, vector<1x8xf32>
    %c5 = arith.constant 5 : index
    %c0_37 = arith.constant 0 : index
    %65 = tpu.strided_load %arg11[%c5, %c0_37] {strides = array<i32: 16, 1>} : memref<16x8xf32, #tpu.memory_space<vmem>>, vector<1x8xf32>
    %c6 = arith.constant 6 : index
    %c0_38 = arith.constant 0 : index
    %66 = tpu.strided_load %arg11[%c6, %c0_38] {strides = array<i32: 16, 1>} : memref<16x8xf32, #tpu.memory_space<vmem>>, vector<1x8xf32>
    %c7 = arith.constant 7 : index
    %c0_39 = arith.constant 0 : index
    %67 = tpu.strided_load %arg11[%c7, %c0_39] {strides = array<i32: 16, 1>} : memref<16x8xf32, #tpu.memory_space<vmem>>, vector<1x8xf32>
    %c8 = arith.constant 8 : index
    %c0_40 = arith.constant 0 : index
    %68 = tpu.strided_load %arg11[%c8, %c0_40] {strides = array<i32: 16, 1>} : memref<16x8xf32, #tpu.memory_space<vmem>>, vector<1x8xf32>
    %c9 = arith.constant 9 : index
    %c0_41 = arith.constant 0 : index
    %69 = tpu.strided_load %arg11[%c9, %c0_41] {strides = array<i32: 16, 1>} : memref<16x8xf32, #tpu.memory_space<vmem>>, vector<1x8xf32>
    %c10 = arith.constant 10 : index
    %c0_42 = arith.constant 0 : index
    %70 = tpu.strided_load %arg11[%c10, %c0_42] {strides = array<i32: 16, 1>} : memref<16x8xf32, #tpu.memory_space<vmem>>, vector<1x8xf32>
    %c11 = arith.constant 11 : index
    %c0_43 = arith.constant 0 : index
    %71 = tpu.strided_load %arg11[%c11, %c0_43] {strides = array<i32: 16, 1>} : memref<16x8xf32, #tpu.memory_space<vmem>>, vector<1x8xf32>
    %c12 = arith.constant 12 : index
    %c0_44 = arith.constant 0 : index
    %72 = tpu.strided_load %arg11[%c12, %c0_44] {strides = array<i32: 16, 1>} : memref<16x8xf32, #tpu.memory_space<vmem>>, vector<1x8xf32>
    %c13 = arith.constant 13 : index
    %c0_45 = arith.constant 0 : index
    %73 = tpu.strided_load %arg11[%c13, %c0_45] {strides = array<i32: 16, 1>} : memref<16x8xf32, #tpu.memory_space<vmem>>, vector<1x8xf32>
    %c14 = arith.constant 14 : index
    %c0_46 = arith.constant 0 : index
    %74 = tpu.strided_load %arg11[%c14, %c0_46] {strides = array<i32: 16, 1>} : memref<16x8xf32, #tpu.memory_space<vmem>>, vector<1x8xf32>
    %c15 = arith.constant 15 : index
    %c0_47 = arith.constant 0 : index
    %75 = tpu.strided_load %arg11[%c15, %c0_47] {strides = array<i32: 16, 1>} : memref<16x8xf32, #tpu.memory_space<vmem>>, vector<1x8xf32>
    %76 = tpu.concatenate %60, %61, %62, %63, %64, %65, %66, %67, %68, %69, %70, %71, %72, %73, %74, %75 in 1 : vector<1x8xf32>, vector<1x8xf32>, vector<1x8xf32>, vector<1x8xf32>, vector<1x8xf32>, vector<1x8xf32>, vector<1x8xf32>, vector<1x8xf32>, vector<1x8xf32>, vector<1x8xf32>, vector<1x8xf32>, vector<1x8xf32>, vector<1x8xf32>, vector<1x8xf32>, vector<1x8xf32>, vector<1x8xf32> -> vector<1x128xf32>
    %c0_48 = arith.constant 0 : index
    %c0_49 = arith.constant 0 : index
    %c0_50 = arith.constant 0 : index
    %77 = vector.load %arg9[%c0_48, %c0_49, %c0_50] : memref<1x1x128xf32, #tpu.memory_space<vmem>>, vector<1x1x128xf32>
    %78 = vector.shape_cast %77 : vector<1x1x128xf32> to vector<1x128xf32>
    %79 = vector.shape_cast %76 : vector<1x128xf32> to vector<1x1x128xf32>
    tpu.vector_store %arg9[%c0_48, %c0_49, %c0_50], %79 {strides = array<i32>} : memref<1x1x128xf32, #tpu.memory_space<vmem>>, vector<1x1x128xf32>,
    %80 = vector.shape_cast %51 : vector<2x8x8xf32> to vector<16x8xf32>
    %c0_51 = arith.constant 0 : index
    %c0_52 = arith.constant 0 : index
    %81 = vector.load %arg12[%c0_51, %c0_52] : memref<16x8xf32, #tpu.memory_space<vmem>>, vector<16x8xf32>
    tpu.vector_store %arg12[%c0_51, %c0_52], %80 {strides = array<i32>} : memref<16x8xf32, #tpu.memory_space<vmem>>, vector<16x8xf32>,
    %c0_53 = arith.constant 0 : index
    %c0_54 = arith.constant 0 : index
    %82 = tpu.strided_load %arg12[%c0_53, %c0_54] {strides = array<i32: 16, 1>} : memref<16x8xf32, #tpu.memory_space<vmem>>, vector<1x8xf32>
    %c1_55 = arith.constant 1 : index
    %c0_56 = arith.constant 0 : index
    %83 = tpu.strided_load %arg12[%c1_55, %c0_56] {strides = array<i32: 16, 1>} : memref<16x8xf32, #tpu.memory_space<vmem>>, vector<1x8xf32>
    %c2_57 = arith.constant 2 : index
    %c0_58 = arith.constant 0 : index
    %84 = tpu.strided_load %arg12[%c2_57, %c0_58] {strides = array<i32: 16, 1>} : memref<16x8xf32, #tpu.memory_space<vmem>>, vector<1x8xf32>
    %c3_59 = arith.constant 3 : index
    %c0_60 = arith.constant 0 : index
    %85 = tpu.strided_load %arg12[%c3_59, %c0_60] {strides = array<i32: 16, 1>} : memref<16x8xf32, #tpu.memory_space<vmem>>, vector<1x8xf32>
    %c4_61 = arith.constant 4 : index
    %c0_62 = arith.constant 0 : index
    %86 = tpu.strided_load %arg12[%c4_61, %c0_62] {strides = array<i32: 16, 1>} : memref<16x8xf32, #tpu.memory_space<vmem>>, vector<1x8xf32>
    %c5_63 = arith.constant 5 : index
    %c0_64 = arith.constant 0 : index
    %87 = tpu.strided_load %arg12[%c5_63, %c0_64] {strides = array<i32: 16, 1>} : memref<16x8xf32, #tpu.memory_space<vmem>>, vector<1x8xf32>
    %c6_65 = arith.constant 6 : index
    %c0_66 = arith.constant 0 : index
    %88 = tpu.strided_load %arg12[%c6_65, %c0_66] {strides = array<i32: 16, 1>} : memref<16x8xf32, #tpu.memory_space<vmem>>, vector<1x8xf32>
    %c7_67 = arith.constant 7 : index
    %c0_68 = arith.constant 0 : index
    %89 = tpu.strided_load %arg12[%c7_67, %c0_68] {strides = array<i32: 16, 1>} : memref<16x8xf32, #tpu.memory_space<vmem>>, vector<1x8xf32>
    %c8_69 = arith.constant 8 : index
    %c0_70 = arith.constant 0 : index
    %90 = tpu.strided_load %arg12[%c8_69, %c0_70] {strides = array<i32: 16, 1>} : memref<16x8xf32, #tpu.memory_space<vmem>>, vector<1x8xf32>
    %c9_71 = arith.constant 9 : index
    %c0_72 = arith.constant 0 : index
    %91 = tpu.strided_load %arg12[%c9_71, %c0_72] {strides = array<i32: 16, 1>} : memref<16x8xf32, #tpu.memory_space<vmem>>, vector<1x8xf32>
    %c10_73 = arith.constant 10 : index
    %c0_74 = arith.constant 0 : index
    %92 = tpu.strided_load %arg12[%c10_73, %c0_74] {strides = array<i32: 16, 1>} : memref<16x8xf32, #tpu.memory_space<vmem>>, vector<1x8xf32>
    %c11_75 = arith.constant 11 : index
    %c0_76 = arith.constant 0 : index
    %93 = tpu.strided_load %arg12[%c11_75, %c0_76] {strides = array<i32: 16, 1>} : memref<16x8xf32, #tpu.memory_space<vmem>>, vector<1x8xf32>
    %c12_77 = arith.constant 12 : index
    %c0_78 = arith.constant 0 : index
    %94 = tpu.strided_load %arg12[%c12_77, %c0_78] {strides = array<i32: 16, 1>} : memref<16x8xf32, #tpu.memory_space<vmem>>, vector<1x8xf32>
    %c13_79 = arith.constant 13 : index
    %c0_80 = arith.constant 0 : index
    %95 = tpu.strided_load %arg12[%c13_79, %c0_80] {strides = array<i32: 16, 1>} : memref<16x8xf32, #tpu.memory_space<vmem>>, vector<1x8xf32>
    %c14_81 = arith.constant 14 : index
    %c0_82 = arith.constant 0 : index
    %96 = tpu.strided_load %arg12[%c14_81, %c0_82] {strides = array<i32: 16, 1>} : memref<16x8xf32, #tpu.memory_space<vmem>>, vector<1x8xf32>
    %c15_83 = arith.constant 15 : index
    %c0_84 = arith.constant 0 : index
    %97 = tpu.strided_load %arg12[%c15_83, %c0_84] {strides = array<i32: 16, 1>} : memref<16x8xf32, #tpu.memory_space<vmem>>, vector<1x8xf32>
    %98 = tpu.concatenate %82, %83, %84, %85, %86, %87, %88, %89, %90, %91, %92, %93, %94, %95, %96, %97 in 1 : vector<1x8xf32>, vector<1x8xf32>, vector<1x8xf32>, vector<1x8xf32>, vector<1x8xf32>, vector<1x8xf32>, vector<1x8xf32>, vector<1x8xf32>, vector<1x8xf32>, vector<1x8xf32>, vector<1x8xf32>, vector<1x8xf32>, vector<1x8xf32>, vector<1x8xf32>, vector<1x8xf32>, vector<1x8xf32> -> vector<1x128xf32>
    %c0_85 = arith.constant 0 : index
    %c0_86 = arith.constant 0 : index
    %c0_87 = arith.constant 0 : index
    %99 = vector.load %arg8[%c0_85, %c0_86, %c0_87] : memref<1x1x128xf32, #tpu.memory_space<vmem>>, vector<1x1x128xf32>
    %100 = vector.shape_cast %99 : vector<1x1x128xf32> to vector<1x128xf32>
    %101 = vector.shape_cast %98 : vector<1x128xf32> to vector<1x1x128xf32>
    tpu.vector_store %arg8[%c0_85, %c0_86, %c0_87], %101 {strides = array<i32>} : memref<1x1x128xf32, #tpu.memory_space<vmem>>, vector<1x1x128xf32>,
    return
  }
  func.func @transform_0(%arg0: i32) -> (i32, i32, i32) {
    %c0_i32 = arith.constant 0 : i32
    %c0_i32_0 = arith.constant 0 : i32
    %c0_i32_1 = arith.constant 0 : i32
    return %arg0, %c0_i32, %c0_i32_0 : i32, i32, i32
  }
  func.func @transform_1(%arg0: i32) -> (i32, i32) {
    %c0_i32 = arith.constant 0 : i32
    %c0_i32_0 = arith.constant 0 : i32
    %c0_i32_1 = arith.constant 0 : i32
    return %c0_i32, %c0_i32_0 : i32, i32
  }
  func.func @transform_2(%arg0: i32) -> (i32, i32) {
    %c0_i32 = arith.constant 0 : i32
    %c0_i32_0 = arith.constant 0 : i32
    %c0_i32_1 = arith.constant 0 : i32
    return %c0_i32, %c0_i32_0 : i32, i32
  }
  func.func @transform_3(%arg0: i32) -> (i32, i32) {
    %c0_i32 = arith.constant 0 : i32
    %c0_i32_0 = arith.constant 0 : i32
    %c0_i32_1 = arith.constant 0 : i32
    return %c0_i32, %c0_i32_0 : i32, i32
  }
  func.func @transform_4(%arg0: i32) -> (i32, i32) {
    %c0_i32 = arith.constant 0 : i32
    %c0_i32_0 = arith.constant 0 : i32
    %c0_i32_1 = arith.constant 0 : i32
    return %c0_i32, %c0_i32_0 : i32, i32
  }
  func.func @transform_5(%arg0: i32) -> (i32, i32) {
    %c0_i32 = arith.constant 0 : i32
    %c0_i32_0 = arith.constant 0 : i32
    %c0_i32_1 = arith.constant 0 : i32
    return %c0_i32, %c0_i32_0 : i32, i32
  }
  func.func @transform_6(%arg0: i32) -> (i32, i32) {
    %c0_i32 = arith.constant 0 : i32
    %c0_i32_0 = arith.constant 0 : i32
    %c0_i32_1 = arith.constant 0 : i32
    return %c0_i32, %c0_i32_0 : i32, i32
  }
  func.func @transform_7(%arg0: i32) -> (i32, i32, i32) {
    %c0_i32 = arith.constant 0 : i32
    %c0_i32_0 = arith.constant 0 : i32
    %c0_i32_1 = arith.constant 0 : i32
    return %arg0, %c0_i32, %c0_i32_0 : i32, i32, i32
  }
  func.func @transform_8(%arg0: i32) -> (i32, i32, i32) {
    %c0_i32 = arith.constant 0 : i32
    %c0_i32_0 = arith.constant 0 : i32
    %c0_i32_1 = arith.constant 0 : i32
    return %arg0, %c0_i32, %c0_i32_0 : i32, i32, i32
  }
  func.func @transform_9(%arg0: i32) -> (i32, i32, i32) {
    %c0_i32 = arith.constant 0 : i32
    %c0_i32_0 = arith.constant 0 : i32
    %c0_i32_1 = arith.constant 0 : i32
    return %arg0, %c0_i32, %c0_i32_0 : i32, i32, i32
  }
}

</mosaic_0001>

<bundles_post_ra>
// kernel: tpu_custom_call.1
= control target key start
LH: loop header
LB: loop body
LE: loop exit
PB: predicated region body
PF: predicated region fallthrough
CT: control target
= control target key end

     0   :  { %15 = vsyncpa [#allocation5], 0  ;;  %vm42_vm0 = vcmask 130048   ;;  %s1180_s0 = inlined_call_operand.vmem [shape: f32[1,16,16], index: 0, kind: input, shape index: {}]   ;;  %s1181_s1 = inlined_call_operand.vmem [shape: f32[16,96], index: 1, kind: input, shape index: {}]   ;;  %s1182_s2 = inlined_call_operand.vmem [shape: f32[1,96], index: 2, kind: input, shape index: {}]   ;;  %s1183_s3 = inlined_call_operand.vmem [shape: f32[32,64], index: 3, kind: input, shape index: {}]   ;;  %s1184_s4 = inlined_call_operand.vmem [shape: f32[1,64], index: 4, kind: input, shape index: {}]   ;;  %s1185_s5 = inlined_call_operand.vmem [shape: f32[64,4], index: 5, kind: input, shape index: {}]   ;;  %s1186_s6 = inlined_call_operand.vmem [shape: f32[1,4], index: 6, kind: input, shape index: {}]   ;;  %s1187_s7 = inlined_call_operand.hbm [shape: f32[1,1,128], index: 7, kind: output, shape index: {0}]   ;;  %s1188_s8 = inlined_call_operand.hbm [shape: f32[1,1,128], index: 8, kind: output, shape index: {1}]   ;;  %s1189_s9 = inlined_call_operand.vmem [shape: f32[1,16,6], index: 9, kind: output, shape index: {2}]  }
   0x1   :  { %v34_v0 = vld [vmem:[%s1181_s1 + $0x8] sm:$0xff]  ;;  %v33_v1 = vld [vmem:[%s1181_s1] sm:$0xff] }
   0x2   :  { %v31_v2 = vld [vmem:[%s1180_s0] sm:$0xff]  ;;  %812 = vmatprep.subr.mxu0 %v34_v0 }
   0x3   :  { %816 = vmatprep.mubr.msk.f32.mxu0 %vm42_vm0, %v31_v2 }
   0x4   :  { %16 = vsyncpa [#allocation7], 0  ;;  %813 = vmatpush3.msra.mxu0 %v34_v0  ;;  %v32_v3 = vld [vmem:[%s1180_s0 + $0x8] sm:$0xff]  ;;  %v129_v4 = vld [vmem:[%s1183_s3 + $0x18] sm:$0xff]  ;;  %v934_v8 = vmov 0.0   ;;  %vm143_vm1 = vcmask 261120  }
   0x5   :  { %814 = vmatprep.subr.mxu0 %v33_v1  ;;  %v128_v5 = vld [vmem:[%s1183_s3 + $0x10] sm:$0xff]  ;;  %819 = vmatprep.subr.mxu1 %v129_v4  ;;  %v127_v6 = vld [vmem:[%s1183_s3 + $0x8] sm:$0xff]  ;;  %v126_v7 = vld [vmem:[%s1183_s3] sm:$0xff]  ;;  %s935_s3 = smov 64   ;;  %vm240_vm2 = vcmask 523264   ;;  %vm936_vm3 = vmmov 0  }
   0x6   :  { %815 = vmatpush3.msra.mxu0 %v33_v1  ;;  %820 = vmatpush3.msra.mxu1 %v129_v4  ;;  %v773_v10 = vld [vmem:[%s1182_s2] ss:$0 sm:$0xff]  ;;  %v232_v15 = vld [vmem:[%s1185_s5 + $0x38] sm:$0xff]  ;;  %v231_v16 = vld [vmem:[%s1185_s5 + $0x30] sm:$0xff]  ;;  %vm478_vm4 = vcmask 64512   ;;  %s939_s20 = smov 48  }
   0x7   :  { %817 = vmatmul.mubr.msk.f32.vlgmr.msra.gmra.mxu0 %vm42_vm0, %v32_v3  ;;  %821 = vmatprep.subr.mxu1 %v128_v5  ;;  %v230_v17 = vld [vmem:[%s1185_s5 + $0x28] sm:$0xff]  ;;  %v229_v19 = vld [vmem:[%s1185_s5 + $0x20] sm:$0xff]  ;;  %v228_v22 = vld [vmem:[%s1185_s5 + $0x18] sm:$0xff]  ;;  %s940_s21 = smov 16   ;;  %s941_s0 = smov 56   ;;  %vm607_vm5 = vcmask 195584  }
   0x8   :  { %822 = vmatpush3.msra.mxu1 %v128_v5  ;;  %830 = vmatprep.subr.mxu0 %v232_v15  ;;  %v227_v23 = vld [vmem:[%s1185_s5 + $0x10] sm:$0xff]  ;;  %v226_v24 = vld [vmem:[%s1185_s5 + $0x8] sm:$0xff]  ;;  %v225_v25 = vld [vmem:[%s1185_s5] sm:$0xff]  ;;  %s938_s5 = smov 8   ;;  %s942_s22 = smov 32   ;;  %vm610_vm6 = vcmask 326656  }
   0x9   :  { %823 = vmatprep.subr.mxu1 %v127_v6  ;;  %831 = vmatpush3.msra.mxu0 %v232_v15  ;;  %v776_v26 = vld [vmem:[%s1184_s4] ss:$0 sm:$0xff]  ;;  %s937_s4 = smov 24   ;;  %s943_s23 = smov 40   ;;  %vm612_vm7 = vcmask 392192   ;;  %vm614_vm8 = vcmask 457728  }
   0xa   :  { %824 = vmatpush3.msra.mxu1 %v127_v6  ;;  %832 = vmatprep.subr.mxu0 %v231_v16  ;;  %s944_s24 = smov 72   ;;  %s945_s25 = smov 80   ;;  %vm617_vm9 = vcmask 588800   ;;  %vm619_vm10 = vcmask 654336   ;;  %vm621_vm11 = vcmask 719872   ;;  %vm623_vm12 = vcmask 785408  }
   0xb   :  { %825 = vmatprep.subr.mxu1 %v126_v7  ;;  %833 = vmatpush3.msra.mxu0 %v231_v16  ;;  %s946_s26 = smov 88   ;;  %s947_s27 = smov 96   ;;  %vm625_vm13 = vcmask 850944   ;;  %vm1191_vm14 = vcmask 916480   ;;  %vm1190_vm15 = vcmask 982016  }
   0xc   :  { %826 = vmatpush3.msra.mxu1 %v126_v7  ;;  %834 = vmatprep.subr.mxu0 %v230_v17  ;;  %s948_s28 = smov 104   ;;  %s949_s29 = smov 112  }
   0xd   :  { %849 = vmatprep.subr.mxu1 %v934_v8  ;;  %835 = vmatpush3.msra.mxu0 %v230_v17  ;;  %s950_s30 = smov 120  }
   0xe   :  { %836 = vmatprep.subr.mxu0 %v229_v19 }
   0xf   :  { %837 = vmatpush3.msra.mxu0 %v229_v19 }
  0x10   :  { %838 = vmatprep.subr.mxu0 %v228_v22 }
  0x11   :  { %839 = vmatpush3.msra.mxu0 %v228_v22 }
  0x12   :  { %840 = vmatprep.subr.mxu0 %v227_v23 }
  0x13   :  { %841 = vmatpush3.msra.mxu0 %v227_v23 }
  0x14   :  { %842 = vmatprep.subr.mxu0 %v226_v24 }
  0x15   :  { %843 = vmatpush3.msra.mxu0 %v226_v24 }
  0x16   :  { %844 = vmatprep.subr.mxu0 %v225_v25 }
  0x17   :  { %845 = vmatpush3.msra.mxu0 %v225_v25 }
  0xc7   :  { %v818_v9 = vpop.f32.mrf.mxu0 }
  0xc8   :  { %v121_v13 = vadd.f32 %v818_v9, %v773_v10 }
  0xc9   :  { %v115_v11 = vpop.f32.mrf.mxu0 }
  0xca   :  { %v116_v12 = vadd.f32 %v773_v10, %v115_v11  ;;  %v125_v18 = vmax.f32 %v121_v13, 0.0 }
  0xcc   :  { %v124_v14 = vmax.f32 %v116_v12, 0.0 }
  0xce   :  { %139 = vrot.lane.b32.xlu0 %v124_v14, %s935_s3 }
  0xd2   :  { %141 = vrot.lane.b32.xlu0 %v125_v18, %s935_s3 }
 0x140   :  { %v140_v20 = vpop.permute.xlu0 %139 }
 0x141   :  { %827 = vmatprep.mubr.msk.f32.mxu1 %vm143_vm1, %v140_v20 }
 0x144   :  { %v142_v21 = vpop.permute.xlu0 %141 }
 0x145   :  { %828 = vmatmul.mubr.msk.f32.vlgmr.msra.gmra.mxu1 %vm143_vm1, %v142_v21 }
 0x146   :  { %850 = vmatpush3.xpose.msk.msra.mxu1 %vm240_vm2, %v124_v14  ;;  %851 = vmatprep.mubr.msk.f32.mxu1 %vm936_vm3, %v934_v8 }
 0x147   :  { %854 = vmatprep.subr.mxu1 %v934_v8 }
 0x149   :  { %852 = vmatmul.mubr.msk.f32.vlgmr.msra.gmra.mxu1 %vm240_vm2, %v124_v14 }
 0x14a   :  { %855 = vmatpush3.xpose.msk.msra.mxu1 %vm240_vm2, %v125_v18  ;;  %856 = vmatprep.mubr.msk.f32.mxu1 %vm936_vm3, %v934_v8 }
 0x14d   :  { %857 = vmatmul.mubr.msk.f32.vlgmr.msra.gmra.mxu1 %vm240_vm2, %v125_v18 }
 0x205   :  { %v829_v27 = vpop.f32.mrf.mxu1 }
 0x206   :  { %v220_v28 = vadd.f32 %v829_v27, %v776_v26 }
 0x207   :  { %v214_v29 = vpop.f32.mrf.mxu1 }
 0x208   :  { %v215_v30 = vadd.f32 %v776_v26, %v214_v29  ;;  %v224_v35 = vmax.f32 %v220_v28, 0.0 }
 0x209   :  { %v1067_v31 = vpop.f32.mrf.mxu1 }
 0x20a   :  { %v223_v32 = vmax.f32 %v215_v30, 0.0  ;;  %512 = vst.msk [vmem:[#allocation2] sm:$0xff] %vm478_vm4, %v1067_v31  ;;  %v485_v33 = vsel %vm478_vm4, %v1067_v31, inf  ;;  %v479_v34 = vsel %vm478_vm4, %v1067_v31, -inf }
 0x20b   :  { %486 = vmin.xlane.f32.xlu0 %v485_v33  ;;  %480 = vmax.xlane.f32.xlu1 %v479_v34  ;;  %v853_v36 = vpop.f32.mrf.mxu1 }
 0x20c   :  { %846 = vmatprep.mubr.msk.f32.mxu0 %vm240_vm2, %v223_v32 }
 0x20d   :  { %847 = vmatmul.mubr.msk.f32.vlgmr.msra.gmra.mxu0 %vm240_vm2, %v224_v35  ;;  %v1077_v37 = vpop.f32.mrf.mxu1 }
 0x20e   :  { %513 = vst.msk [vmem:[#allocation2 + $0x8] sm:$0xff] %vm478_vm4, %v1077_v37  ;;  %v482_v38 = vsel %vm478_vm4, %v1077_v37, -inf  ;;  %v488_v40 = vsel %vm478_vm4, %v1077_v37, inf }
 0x20f   :  { %483 = vmax.xlane.f32.xlu1 %v482_v38  ;;  %v858_v39 = vpop.f32.mrf.mxu1 }
 0x211   :  { %v520_v41 = vld [vmem:[#allocation2 + $0x3] ss:$16 sm:$0x1]  ;;  %v516_v42 = vld [vmem:[#allocation2 + $0x1] ss:$16 sm:$0x1] }
 0x212   :  { %v526_v43 = vld [vmem:[#allocation2 + $0x6] ss:$16 sm:$0x1]  ;;  %v518_v44 = vld [vmem:[#allocation2 + $0x2] ss:$16 sm:$0x1] }
 0x213   :  { %489 = vmin.xlane.f32.xlu1 %v488_v40  ;;  %v528_v45 = vld [vmem:[#allocation2 + $0x7] ss:$16 sm:$0x1]  ;;  %v522_v46 = vld [vmem:[#allocation2 + $0x4] ss:$16 sm:$0x1] }
 0x214   :  { %v524_v48 = vld [vmem:[#allocation2 + $0x5] ss:$16 sm:$0x1]  ;;  %v514_v7 = vld [vmem:[#allocation2] ss:$16 sm:$0x1] }
 0x215   :  { %v530_v47 = vld [vmem:[#allocation2 + $0x8] ss:$16 sm:$0x1]  ;;  %v532_v49 = vld [vmem:[#allocation2 + $0x9] ss:$16 sm:$0x1] }
 0x216   :  { %v534_v50 = vld [vmem:[#allocation2 + $0xa] ss:$16 sm:$0x1]  ;;  %v536_v51 = vld [vmem:[#allocation2 + $0xb] ss:$16 sm:$0x1] }
 0x217   :  { %v538_v52 = vld [vmem:[#allocation2 + $0xc] ss:$16 sm:$0x1]  ;;  %v540_v53 = vld [vmem:[#allocation2 + $0xd] ss:$16 sm:$0x1] }
 0x218   :  { %v542_v54 = vld [vmem:[#allocation2 + $0xe] ss:$16 sm:$0x1]  ;;  %v544_v55 = vld [vmem:[#allocation2 + $0xf] ss:$16 sm:$0x1] }
 0x221   :  { %554 = vrot.lane.b32.xlu0 %v520_v41, %s937_s4 }
 0x224   :  { %546 = vrot.lane.b32.xlu1 %v516_v42, %s938_s5 }
 0x225   :  { %566 = vrot.lane.b32.xlu0 %v526_v43, %s939_s20 }
 0x228   :  { %550 = vrot.lane.b32.xlu1 %v518_v44, %s940_s21 }
 0x229   :  { %570 = vrot.lane.b32.xlu0 %v528_v45, %s941_s0 }
 0x22c   :  { %558 = vrot.lane.b32.xlu1 %v522_v46, %s942_s22  ;;  %v779_v46 = vld [vmem:[%s1186_s6] ss:$0 sm:$0xff]  ;;  %s951_s6 = smov [#allocation6]  }
 0x22d   :  { %574 = vrot.lane.b32.xlu0 %v530_v47, %s935_s3 }
 0x230   :  { %562 = vrot.lane.b32.xlu1 %v524_v48, %s943_s23 }
 0x231   :  { %578 = vrot.lane.b32.xlu0 %v532_v49, %s944_s24 }
 0x235   :  { %582 = vrot.lane.b32.xlu0 %v534_v50, %s945_s25 }
 0x239   :  { %586 = vrot.lane.b32.xlu0 %v536_v51, %s946_s26 }
 0x23d   :  { %590 = vrot.lane.b32.xlu0 %v538_v52, %s947_s27 }
 0x241   :  { %594 = vrot.lane.b32.xlu0 %v540_v53, %s948_s28 }
 0x245   :  { %598 = vrot.lane.b32.xlu0 %v542_v54, %s949_s29 }
 0x249   :  { %602 = vrot.lane.b32.xlu0 %v544_v55, %s950_s30 }
 0x294   :  { %v1100_v56 = vpop.xlane.xlu0 %486  ;;  %v1102_v57 = vpop.xlane.xlu1 %480 }
 0x295   :  { %v493_v58 = vadd.f32 1e-13, %v1102_v57  ;;  %v491_v2 = vsub.f32 %v1067_v31, %v1100_v56 }
 0x297   :  { %878 = vrcp.f32 %v493_v58 }
 0x298   :  { %v555_v59 = vpop.permute.xlu0 %554  ;;  %v1105_v60 = vpop.xlane.xlu1 %483 }
 0x299   :  { %v494_v61 = vadd.f32 1e-13, %v1105_v60 }
 0x29b   :  { %880 = vrcp.f32 %v494_v61 }
 0x29c   :  { %v567_v62 = vpop.permute.xlu0 %566  ;;  %v1108_v63 = vpop.xlane.xlu1 %489 }
 0x29d   :  { %v492_v9 = vsub.f32 %v1077_v37, %v1108_v63 }
 0x2a0   :  { %v571_v0 = vpop.permute.xlu0 %570  ;;  %v547_v1 = vpop.permute.xlu1 %546 }
 0x2a1   :  { %v605_v10 = vsel %vm478_vm4, %v514_v7, %v547_v1 }
 0x2a4   :  { %v879_v3 = vpop.eup %878  ;;  %v575_v4 = vpop.permute.xlu0 %574 }
 0x2a5   :  { %v551_v5 = vpop.permute.xlu1 %550  ;;  %v496_v6 = vmul.f32 %v879_v3, %v491_v2 }
 0x2a6   :  { %v606_v12 = vsel %vm42_vm0, %v605_v10, %v551_v5 }
 0x2a7   :  { %v499_v8 = vmax.f32 %v496_v6, 0.01  ;;  %v608_v18 = vsel %vm607_vm5, %v606_v12, %v555_v59 }
 0x2a8   :  { %v881_v11 = vpop.eup %880  ;;  %v579_v13 = vpop.permute.xlu0 %578 }
 0x2a9   :  { %v559_v14 = vpop.permute.xlu1 %558  ;;  %v501_v15 = vmin.f32 %v499_v8, 0.99  ;;  %v498_v16 = vmul.f32 %v881_v11, %v492_v9 }
 0x2aa   :  { %v609_v19 = vsel %vm143_vm1, %v608_v18, %v559_v14 }
 0x2ab   :  { %632 = vst.msk [vmem:[#allocation3] sm:$0xff] %vm478_vm4, %v501_v15  ;;  %v500_v17 = vmax.f32 %v498_v16, 0.01 }
 0x2ac   :  { %v583_v20 = vpop.permute.xlu0 %582 }
 0x2ad   :  { %v563_v21 = vpop.permute.xlu1 %562  ;;  %v502_v22 = vmin.f32 %v500_v17, 0.99 }
 0x2ae   :  { %v611_v23 = vsel %vm610_vm6, %v609_v19, %v563_v21 }
 0x2af   :  { %v613_v24 = vsel %vm612_vm7, %v611_v23, %v567_v62  ;;  %633 = vst.msk [vmem:[#allocation3 + $0x8] sm:$0xff] %vm478_vm4, %v502_v22 }
 0x2b0   :  { %v615_v25 = vsel %vm614_vm8, %v613_v24, %v571_v0  ;;  %v587_v26 = vpop.permute.xlu0 %586 }
 0x2b1   :  { %v616_v27 = vsel %vm240_vm2, %v615_v25, %v575_v4 }
 0x2b2   :  { %v636_v28 = vld [vmem:[#allocation3 + $0x1] ss:$16 sm:$0x1]  ;;  %v618_v30 = vsel %vm617_vm9, %v616_v27, %v579_v13  ;;  %v638_v31 = vld [vmem:[#allocation3 + $0x2] ss:$16 sm:$0x1] }
 0x2b3   :  { %666 = vrot.lane.b32.xlu1 %v636_v28, %s938_s5  ;;  %v620_v32 = vsel %vm619_vm10, %v618_v30, %v583_v20  ;;  %v640_v34 = vld [vmem:[#allocation3 + $0x3] ss:$16 sm:$0x1]  ;;  %v642_v38 = vld [vmem:[#allocation3 + $0x4] ss:$16 sm:$0x1] }
 0x2b4   :  { %v591_v29 = vpop.permute.xlu0 %590  ;;  %v622_v35 = vsel %vm621_vm11, %v620_v32, %v587_v26  ;;  %v644_v43 = vld [vmem:[#allocation3 + $0x5] ss:$16 sm:$0x1]  ;;  %v646_v44 = vld [vmem:[#allocation3 + $0x6] ss:$16 sm:$0x1] }
 0x2b5   :  { %v624_v37 = vsel %vm623_vm12, %v622_v35, %v591_v29  ;;  %v648_v45 = vld [vmem:[#allocation3 + $0x7] ss:$16 sm:$0x1] }
 0x2b6   :  { %v650_v49 = vld [vmem:[#allocation3 + $0x8] ss:$16 sm:$0x1]  ;;  %v652_v54 = vld [vmem:[#allocation3 + $0x9] ss:$16 sm:$0x1] }
 0x2b7   :  { %670 = vrot.lane.b32.xlu1 %v638_v31, %s940_s21  ;;  %v654_v55 = vld [vmem:[#allocation3 + $0xa] ss:$16 sm:$0x1]  ;;  %v656_v58 = vld [vmem:[#allocation3 + $0xb] ss:$16 sm:$0x1] }
 0x2b8   :  { %v595_v33 = vpop.permute.xlu0 %594  ;;  %v658_v59 = vld [vmem:[#allocation3 + $0xc] ss:$16 sm:$0x1]  ;;  %v660_v2 = vld [vmem:[#allocation3 + $0xd] ss:$16 sm:$0x1] }
 0x2b9   :  { %v626_v39 = vsel %vm625_vm13, %v624_v37, %v595_v33 }
 0x2bb   :  { %674 = vrot.lane.b32.xlu1 %v640_v34, %s937_s4 }
 0x2bc   :  { %v599_v36 = vpop.permute.xlu0 %598 }
 0x2bd   :  { %v628_v40 = vsel %vm1191_vm14, %v626_v39, %v599_v36 }
 0x2bf   :  { %678 = vrot.lane.b32.xlu1 %v642_v38, %s942_s22 }
 0x2c0   :  { %v603_v41 = vpop.permute.xlu0 %602 }
 0x2c1   :  { %v630_v42 = vsel %vm1190_vm15, %v628_v40, %v603_v41 }
 0x2c2   :  { %631 = vst [vmem:[#allocation6] sm:$0x1] %v630_v42 }
 0x2c3   :  { %682 = vrot.lane.b32.xlu1 %v644_v43, %s943_s23 }
 0x2c7   :  { %686 = vrot.lane.b32.xlu1 %v646_v44, %s939_s20 }
 0x2cb   :  { %690 = vrot.lane.b32.xlu1 %v648_v45, %s941_s0 }
 0x2cd   :  { %v848_v47 = vpop.f32.mrf.mxu0 }
 0x2ce   :  { %v319_v48 = vadd.f32 %v848_v47, %v779_v46 }
 0x2cf   :  { %694 = vrot.lane.b32.xlu1 %v650_v49, %s935_s3  ;;  %v313_v50 = vpop.f32.mrf.mxu0  ;;  %s757_s3 = sshll.u32 %s951_s6, 4  ;;  %s758_s3 = int_to_ptr.vmem [resolvable:$true] %s757_s3 }
 0x2d0   :  { %v783_v51 = vmul.f32 -1.442695, %v319_v48  ;;  %v314_v52 = vadd.f32 %v779_v46, %v313_v50  ;;  %s890_s11 = scalar_lea.vmem %s758_s3, 16  ;;  %s894_s12 = scalar_lea.vmem %s758_s3, 32 }
 0x2d1   :  { %p891_p0 = scmp.ne.s32.totalorder %s758_s3, %s890_s11  ;;  %p895_p1 = scmp.lt.s32.totalorder %s758_s3, %s758_s3 }
 0x2d2   :  { %882 = vpow2.f32 %v783_v51  ;;  %v782_v53 = vmul.f32 -1.442695, %v314_v52  ;;  %p896_p2 = scmp.lt.s32.totalorder %s894_s12, %s890_s11 }
 0x2d3   :  { %698 = vrot.lane.b32.xlu1 %v652_v54, %s944_s24 }
 0x2d4   :  { %884 = vpow2.f32 %v782_v53  ;;  %p897_p3 = por %p896_p2, %p895_p1 }
 0x2d6   :  { %p898_p4 = pnand %p897_p3, %p891_p0 }
 0x2d7   :  { %702 = vrot.lane.b32.xlu1 %v654_v55, %s945_s25 }
 0x2db   :  { %706 = vrot.lane.b32.xlu1 %v656_v58, %s946_s26 }
 0x2df   :  { %v883_v61 = vpop.eup %882  ;;  %710 = vrot.lane.b32.xlu1 %v658_v59, %s947_s27 }
 0x2e0   :  { %v329_v62 = vadd.f32 1.0, %v883_v61 }
 0x2e1   :  { %v885_v0 = vpop.eup %884 }
 0x2e2   :  { %886 = vrcp.f32 %v329_v62  ;;  %v328_v1 = vadd.f32 1.0, %v885_v0 }
 0x2e3   :  { %714 = vrot.lane.b32.xlu1 %v660_v2, %s948_s28 }
 0x2e4   :  { %901 = shalt.err (!%p898_p4)
}
 0x2e5   :  { %760 = dma.vmem_to_hbm [thread:$0]  %s758_s3, 16, %s1188_s8, [#allocation7]   ;;  %888 = vrcp.f32 %v328_v1  ;;  %v662_v3 = vld [vmem:[#allocation3 + $0xe] ss:$16 sm:$0x1]  ;;  %vm503_vm3 = vcmask 31744  }
 0x2e6   :  { %v664_v4 = vld [vmem:[#allocation3 + $0xf] ss:$16 sm:$0x1]  ;;  %vm506_vm15 = vcmask 39936   ;;  %vm509_vm14 = vcmask 48128  }
 0x2e7   :  { %718 = vrot.lane.b32.xlu1 %v662_v3, %s949_s29  ;;  %v634_v20 = vld [vmem:[#allocation3] ss:$16 sm:$0x1] }
 0x2eb   :  { %722 = vrot.lane.b32.xlu1 %v664_v4, %s950_s30 }
 0x2ef   :  { %v887_v5 = vpop.eup %886 }
 0x2f0   :  { %v505_v6 = vsel %vm503_vm3, %v887_v5, %v1105_v60 }
 0x2f1   :  { %v508_v8 = vsel %vm506_vm15, %v505_v6, %v1108_v63 }
 0x2f2   :  { %v889_v7 = vpop.eup %888  ;;  %511 = vst.msk [vmem:[%s1189_s9 + $0x8] sm:$0xff] %vm509_vm14, %v508_v8 }
 0x2f3   :  { %v504_v9 = vsel %vm503_vm3, %v889_v7, %v1102_v57 }
 0x2f4   :  { %v507_v10 = vsel %vm506_vm15, %v504_v9, %v1100_v56 }
 0x2f5   :  { %510 = vst.msk [vmem:[%s1189_s9] sm:$0xff] %vm509_vm14, %v507_v10  ;;  %s952_s9 = smov [#allocation4]  }
 0x2f6   :  { %s747_s1 = sshll.u32 %s952_s9, 4  ;;  %s748_s1 = int_to_ptr.vmem [resolvable:$true] %s747_s1 }
 0x2f7   :  { %s910_s18 = scalar_lea.vmem %s748_s1, 16  ;;  %s914_s19 = scalar_lea.vmem %s748_s1, 32 }
 0x2f8   :  { %p911_p5 = scmp.ne.s32.totalorder %s748_s1, %s910_s18  ;;  %p915_p6 = scmp.lt.s32.totalorder %s748_s1, %s748_s1 }
 0x2f9   :  { %p916_p7 = scmp.lt.s32.totalorder %s914_s19, %s910_s18 }
 0x2fb   :  { %p917_p8 = por %p916_p7, %p915_p6 }
 0x2fd   :  { %p918_p9 = pnand %p917_p8, %p911_p5 }
 0x325   :  { %v667_v11 = vpop.permute.xlu1 %666 }
 0x326   :  { %v725_v57 = vsel %vm478_vm4, %v634_v20, %v667_v11 }
 0x329   :  { %v671_v12 = vpop.permute.xlu1 %670 }
 0x32a   :  { %v726_v56 = vsel %vm42_vm0, %v725_v57, %v671_v12  ;;  %vm1192_vm0 = vcmask 916480  }
 0x32d   :  { %v675_v13 = vpop.permute.xlu1 %674 }
 0x32e   :  { %v727_v22 = vsel %vm607_vm5, %v726_v56, %v675_v13 }
 0x331   :  { %v679_v14 = vpop.permute.xlu1 %678 }
 0x332   :  { %v728_v23 = vsel %vm143_vm1, %v727_v22, %v679_v14  ;;  %vm1193_vm1 = vcmask 982016  }
 0x335   :  { %v683_v60 = vpop.permute.xlu1 %682 }
 0x336   :  { %v729_v24 = vsel %vm610_vm6, %v728_v23, %v683_v60 }
 0x339   :  { %v687_v15 = vpop.permute.xlu1 %686 }
 0x33a   :  { %v730_v25 = vsel %vm612_vm7, %v729_v24, %v687_v15 }
 0x33d   :  { %v691_v16 = vpop.permute.xlu1 %690 }
 0x33e   :  { %v731_v27 = vsel %vm614_vm8, %v730_v25, %v691_v16 }
 0x341   :  { %v695_v63 = vpop.permute.xlu1 %694 }
 0x342   :  { %v732_v28 = vsel %vm240_vm2, %v731_v27, %v695_v63 }
 0x345   :  { %v699_v17 = vpop.permute.xlu1 %698 }
 0x346   :  { %v733_v29 = vsel %vm617_vm9, %v732_v28, %v699_v17 }
 0x349   :  { %v703_v18 = vpop.permute.xlu1 %702 }
 0x34a   :  { %v734_v30 = vsel %vm619_vm10, %v733_v29, %v703_v18 }
 0x34d   :  { %v707_v19 = vpop.permute.xlu1 %706 }
 0x34e   :  { %v735_v32 = vsel %vm621_vm11, %v734_v30, %v707_v19 }
 0x351   :  { %v711_v21 = vpop.permute.xlu1 %710 }
 0x352   :  { %v736_v33 = vsel %vm623_vm12, %v735_v32, %v711_v21 }
 0x355   :  { %v715_v26 = vpop.permute.xlu1 %714 }
 0x356   :  { %v737_v34 = vsel %vm625_vm13, %v736_v33, %v715_v26 }
 0x359   :  { %v719_v31 = vpop.permute.xlu1 %718 }
 0x35a   :  { %v738_v35 = vsel %vm1192_vm0, %v737_v34, %v719_v31 }
 0x35d   :  { %v723_v36 = vpop.permute.xlu1 %722 }
 0x35e   :  { %v739_v37 = vsel %vm1193_vm1, %v738_v35, %v723_v36 }
 0x35f   :  { %740 = vst [vmem:[#allocation4] sm:$0x1] %v739_v37 }
 0x360   :  { %921 = shalt.err (!%p918_p9)
}
 0x361   :  { %750 = dma.vmem_to_hbm [thread:$0]  %s748_s1, 16, %s1187_s7, [#allocation5]  }
 0x362   :  { %930 = dma.done.wait [#allocation5], 16  }
 0x363   :  { %931 = vsyncadd [#allocation5], 4294967280 }
 0x364   :  { %932 = dma.done.wait [#allocation7], 16  }
 0x365   :  { %933 = vsyncadd [#allocation7], 4294967280 }
 0x366   :  { %771 = vsyncpa [#allocation5], 1 }
 0x367   :  { %772 = vsyncpa [#allocation7], 1 }

</bundles_post_ra>
